<compile_context>
chip_gen: v7x
topology: tpu7x:2x2x1
jax: 0.10.0
libtpu: 0.0.40
codegen_flags: <defaults>
</compile_context>

<pallas_src>
import jax
import jax.numpy as jnp
from jax import lax
from jax.experimental import pallas as pl
from jax.experimental.pallas import tpu as pltpu

_MiB = 1024 * 1024
_SCRATCH_FUDGE = 2 * _MiB  # headroom for Mosaic internal scratch / semaphores


def _round_up(x: int, m: int) -> int:
    return ((x + m - 1) // m) * m


def _vmem_capacity_bytes() -> int:
    """Per-TensorCore VMEM capacity; conservative fallback if query fails."""
    try:
        return int(pltpu.get_tpu_info().vmem_capacity_bytes)
    except Exception:
        return 64 * _MiB  # v7x per-core size: safe lower bound everywhere


def mf_kernel(u_ref, v_ref, o_ref):
    # u_ref: (tm, K), v_ref: (tn, K) -> o_ref: (tm, tn).
    # Contract on the last dim of BOTH operands: the MXU consumes the RHS
    # transposed directly, so no per-tile transpose / VMEM re-layout is needed.
    o_ref[...] = lax.dot_general(
        u_ref[...],
        v_ref[...],
        dimension_numbers=(((1,), (1,)), ((), ())),
        preferred_element_type=jnp.float32,
    ).astype(o_ref.dtype)


def matrix_factorization_forward(U, V):
    n_users, k = U.shape
    n_items, k2 = V.shape
    assert k == k2, "U and V must share the factor dimension k"

    out_dtype = U.dtype
    isz = jnp.dtype(U.dtype).itemsize
    osz = jnp.dtype(out_dtype).itemsize

    # ---- generation-aware VMEM budget (v5e/v6e: 128 MiB, v7x: 64 MiB/TC) ---
    vmem_cap = _vmem_capacity_bytes()
    budget = max(16 * _MiB, vmem_cap - 24 * _MiB)            # 104 / 40 MiB
    vmem_limit = max(32 * _MiB,
                     min(vmem_cap - 8 * _MiB, budget + 6 * _MiB))  # 110 / 46
    # Proxy for "this chip has 2 TensorCores" (v7x has 64 MiB VMEM per core).
    two_tc = vmem_cap < 100 * _MiB

    cost = pl.CostEstimate(
        flops=2 * n_users * n_items * k,
        transcendentals=0,
        bytes_accessed=(n_users * k + n_items * k) * isz
        + n_users * n_items * osz,
    )

    # ---- user-tile candidates (multiples of 8; 512 fills the MXU M dim) ----
    cap_m = _round_up(n_users, 8)
    tm_cands = [min(512, cap_m)]
    for c in (256, 128, 64, 32, 16, 8):
        if c < tm_cands[0]:
            tm_cands.append(c)

    def bytes_a(tm, v_bufs):
        return (2 * tm * k * isz                 # U tile, double-buffered
                + v_bufs * n_items * k * isz     # resident V slab
                + 2 * tm * n_items * osz         # output slab, double-buffered
                + _SCRATCH_FUDGE)

    def bytes_b(tm, tn):
        return (2 * tm * k * isz + 2 * tn * k * isz
                + 2 * tm * tn * osz + _SCRATCH_FUDGE)

    def run(grid, in_specs, out_specs, dim_sem):
        return pl.pallas_call(
            mf_kernel,
            out_shape=jax.ShapeDtypeStruct((n_users, n_items), out_dtype),
            grid_spec=pl.GridSpec(grid=grid, in_specs=in_specs,
                                  out_specs=out_specs),
            compiler_params=pltpu.CompilerParams(
                dimension_semantics=dim_sem,
                vmem_limit_bytes=vmem_limit,
            ),
            cost_estimate=cost,
        )(U, V)

    # ---- strategy A: V fully resident in VMEM, 1-D grid over user tiles ----
    tm_a = next((tm for tm in tm_cands if bytes_a(tm, 1) <= budget), None)
    if tm_a is not None:
        # On a 2-TensorCore part make sure both cores get at least one tile.
        if two_tc and pl.cdiv(n_users, tm_a) < 2 and n_users > 8:
            tm_a = _round_up(pl.cdiv(n_users, 2), 8)
        grid = (pl.cdiv(n_users, tm_a),)

        def call_a(v_pipeline_mode):
            v_kwargs = {}
            if v_pipeline_mode is not None:
                v_kwargs["pipeline_mode"] = v_pipeline_mode
            in_specs = [
                pl.BlockSpec((tm_a, k), lambda i: (i, 0)),
                # V's block index is grid-invariant: DMA'd from HBM exactly
                # once and kept resident for every user tile.
                pl.BlockSpec((n_items, k), lambda i: (0, 0), **v_kwargs),
            ]
            out_specs = pl.BlockSpec((tm_a, n_items), lambda i: (i, 0))
            return run(grid, in_specs, out_specs, ("parallel",))

        try:
            # Single-buffer the invariant V slab (frees n_items*k*isz bytes).
            return call_a(pl.Buffered(1))
        except Exception:
            # Fallback for Pallas versions that reject buffer_count=1.
            return call_a(None)

    # ---- strategy B: 2-D grid, ITEMS on the OUTER axis, USERS inner --------
    # V's block index only depends on the outer axis, so it stays in VMEM
    # across every inner (user) step; only the small U tiles are re-fetched
    # (input re-read factor = n_items/tn instead of n_users/tm).
    tm = min(512, cap_m)
    tn = min(2048, _round_up(n_items, 128))
    while bytes_b(tm, tn) > budget and tn > 256:
        tn = max(256, _round_up(tn // 2, 128))
    while bytes_b(tm, tn) > budget and tm > 8:
        tm = max(8, _round_up(tm // 2, 8))
    # NOTE: k is small (50) for this module; for very large k a third
    # ("arbitrary") K grid axis with a VMEM f32 accumulator would be required.

    grid = (pl.cdiv(n_items, tn), pl.cdiv(n_users, tm))  # (items, users)
    in_specs = [
        pl.BlockSpec((tm, k), lambda j, i: (i, 0)),  # varies on inner axis
        pl.BlockSpec((tn, k), lambda j, i: (j, 0)),  # held across inner axis
    ]
    out_specs = pl.BlockSpec((tm, tn), lambda j, i: (i, j))
    return run(grid, in_specs, out_specs, ("parallel", "parallel"))


if __name__ == "__main__":
    # Deterministic "torch.randn"-style init of the two parameters (k=50 per spec).
    n_users, n_items, k = 128, 256, 50
    key = jax.random.PRNGKey(0)
    ku, kv = jax.random.split(key)
    U = jax.random.normal(ku, (n_users, k), dtype=jnp.float32)
    V = jax.random.normal(kv, (n_items, k), dtype=jnp.float32)

    out = matrix_factorization_forward(U, V)
    out = jax.block_until_ready(out)

    # Sanity check against plain JAX reference.
    ref = U @ V.T
    assert out.shape == (n_users, n_items)
    assert jnp.allclose(out, ref, atol=1e-4, rtol=1e-4)

    print("KERNEL_OK")
</pallas_src>

<mosaic_0001>
module attributes {stable_mosaic.version = 11 : i64} {
  func.func @mf_kernel(%arg0: i32, %arg1: memref<64x50xf32, #tpu.memory_space<vmem>>, %arg2: memref<256x50xf32, #tpu.memory_space<vmem>>, %arg3: memref<64x256xf32, #tpu.memory_space<vmem>>) attributes {dimension_semantics = [#tpu.dimension_semantics<parallel>], iteration_bounds = array<i64: 2>, scalar_prefetch = 0 : i64, scratch_operands = 0 : i64, tpu.core_type = #tpu.core_type<tc>, window_params = [{transform_indices = @transform_0, window_bounds = array<i64: 64, 50>}, {pipeline_mode = #tpu.pipeline_mode<synchronous>, transform_indices = @transform_1, window_bounds = array<i64: 256, 50>}, {transform_indices = @transform_2, window_bounds = array<i64: 64, 256>}]} {
    %c0 = arith.constant 0 : index
    %c0_0 = arith.constant 0 : index
    %0 = vector.load %arg1[%c0, %c0_0] : memref<64x50xf32, #tpu.memory_space<vmem>>, vector<64x50xf32>
    %c0_1 = arith.constant 0 : index
    %c0_2 = arith.constant 0 : index
    %1 = vector.load %arg2[%c0_1, %c0_2] : memref<256x50xf32, #tpu.memory_space<vmem>>, vector<256x50xf32>
    %cst = arith.constant dense<0.000000e+00> : vector<64x256xf32>
    %2 = tpu.matmul %0, %1, %cst {dimension_numbers = #tpu.dot_dimension_numbers<[1], [1], [0], [0], [0, 0, 1, 0], [], []>} : vector<64x50xf32>, vector<256x50xf32>, vector<64x256xf32> -> vector<64x256xf32>
    %c0_3 = arith.constant 0 : index
    %c0_4 = arith.constant 0 : index
    %3 = vector.load %arg3[%c0_3, %c0_4] : memref<64x256xf32, #tpu.memory_space<vmem>>, vector<64x256xf32>
    tpu.vector_store %arg3[%c0_3, %c0_4], %2 {strides = array<i32>} : memref<64x256xf32, #tpu.memory_space<vmem>>, vector<64x256xf32>,
    return
  }
  func.func @transform_0(%arg0: i32) -> (i32, i32) {
    %c0_i32 = arith.constant 0 : i32
    %c0_i32_0 = arith.constant 0 : i32
    return %arg0, %c0_i32 : i32, i32
  }
  func.func @transform_1(%arg0: i32) -> (i32, i32) {
    %c0_i32 = arith.constant 0 : i32
    %c0_i32_0 = arith.constant 0 : i32
    %c0_i32_1 = arith.constant 0 : i32
    return %c0_i32, %c0_i32_0 : i32, i32
  }
  func.func @transform_2(%arg0: i32) -> (i32, i32) {
    %c0_i32 = arith.constant 0 : i32
    %c0_i32_0 = arith.constant 0 : i32
    return %arg0, %c0_i32 : i32, i32
  }
}

module attributes {stable_mosaic.version = 11 : i64} {
  func.func @mf_kernel(%arg0: i32, %arg1: memref<64x50xf32, #tpu.memory_space<vmem>>, %arg2: memref<256x50xf32, #tpu.memory_space<vmem>>, %arg3: memref<64x256xf32, #tpu.memory_space<vmem>>) attributes {dimension_semantics = [#tpu.dimension_semantics<parallel>], iteration_bounds = array<i64: 2>, scalar_prefetch = 0 : i64, scratch_operands = 0 : i64, tpu.core_type = #tpu.core_type<tc>, window_params = [{transform_indices = @transform_0, window_bounds = array<i64: 64, 50>}, {pipeline_mode = #tpu.pipeline_mode<synchronous>, transform_indices = @transform_1, window_bounds = array<i64: 256, 50>}, {transform_indices = @transform_2, window_bounds = array<i64: 64, 256>}]} {
    %c0 = arith.constant 0 : index
    %c0_0 = arith.constant 0 : index
    %0 = vector.load %arg1[%c0, %c0_0] : memref<64x50xf32, #tpu.memory_space<vmem>>, vector<64x50xf32>
    %c0_1 = arith.constant 0 : index
    %c0_2 = arith.constant 0 : index
    %1 = vector.load %arg2[%c0_1, %c0_2] : memref<256x50xf32, #tpu.memory_space<vmem>>, vector<256x50xf32>
    %cst = arith.constant dense<0.000000e+00> : vector<64x256xf32>
    %2 = tpu.matmul %0, %1, %cst {dimension_numbers = #tpu.dot_dimension_numbers<[1], [1], [0], [0], [0, 0, 1, 0], [], []>} : vector<64x50xf32>, vector<256x50xf32>, vector<64x256xf32> -> vector<64x256xf32>
    %c0_3 = arith.constant 0 : index
    %c0_4 = arith.constant 0 : index
    %3 = vector.load %arg3[%c0_3, %c0_4] : memref<64x256xf32, #tpu.memory_space<vmem>>, vector<64x256xf32>
    tpu.vector_store %arg3[%c0_3, %c0_4], %2 {strides = array<i32>} : memref<64x256xf32, #tpu.memory_space<vmem>>, vector<64x256xf32>,
    return
  }
  func.func @transform_0(%arg0: i32) -> (i32, i32) {
    %c0_i32 = arith.constant 0 : i32
    %c0_i32_0 = arith.constant 0 : i32
    return %arg0, %c0_i32 : i32, i32
  }
  func.func @transform_1(%arg0: i32) -> (i32, i32) {
    %c0_i32 = arith.constant 0 : i32
    %c0_i32_0 = arith.constant 0 : i32
    %c0_i32_1 = arith.constant 0 : i32
    return %c0_i32, %c0_i32_0 : i32, i32
  }
  func.func @transform_2(%arg0: i32) -> (i32, i32) {
    %c0_i32 = arith.constant 0 : i32
    %c0_i32_0 = arith.constant 0 : i32
    return %arg0, %c0_i32 : i32, i32
  }
}

</mosaic_0001>

<bundles_post_ra>
// kernel: tpu_custom_call.1
= control target key start
LH: loop header
LB: loop body
LE: loop exit
PB: predicated region body
PF: predicated region fallthrough
CT: control target
= control target key end

     0   :  { %7 = vsyncpa [#allocation3], 0  ;;  %s1127_s0 = inlined_call_operand.vmem [shape: f32[128,50], index: 0, kind: input, shape index: {}]   ;;  %s1128_s1 = inlined_call_operand.vmem [shape: f32[256,50], index: 1, kind: input, shape index: {}]   ;;  %s1129_s2 = inlined_call_operand.hbm [shape: f32[128,256], index: 2, kind: output, shape index: {}]  }
   0x1   :  { %9 = vsyncpa [#allocation3 + $0x1], 0  ;;  %s802_s9 = smov 0   ;;  %s804_s10 = smov 0  }
   0x2   :  { %s806_s11 = smov 0   ;;  %s808_s12 = smov 0  }
   0x3 LB: > { %s823_s13 = sadd.s32 4294967295, %s782_s12   ;;  %s512_s14 = sadd.s32 4294967294, %s782_s12   ;;  %s782_s12 = sphi %s808_s12, %s1137_s12   ;;  %s778_s11 = sphi %s806_s11, %s1136_s11   ;;  %s774_s10 = sphi %s804_s10, %s1135_s10   ;;  %s770_s9 = sphi %s802_s9, %s1134_s9  }
   0x4   : > { %s827_s15 = sadd.s32 1, %s782_s12   ;;  %s69_s16 = sadd.s32 1, %s778_s11 }
   0x5   : > { %s66_s17 = ssub.s32 %s782_s12, %s827_s15  ;;  %p79_p0 = scmp.ne.s32.totalorder %s778_s11, %s774_s10 }
   0x6   : > { %p67_p1 = scmp.eq.s32.totalorder %s66_s17, 0  ;;  %p80_p2 = scmp.eq.s32.totalorder %s823_s13, 1 }
   0x7   : > { %p85_p3 = scmp.ne.s32.totalorder %s774_s10, %s770_s9  ;;  %p86_p4 = scmp.eq.s32.totalorder %s512_s14, 1 }
   0x8   : > { %s838_s18 = scalar_select %p67_p1, %s778_s11, %s69_s16  }
   0x9   : > { %p840_p5 = por %p80_p2, %p79_p0  ;;  %p844_p6 = por %p86_p4, %p85_p3 }
   0xa   : > { %p515_p7 = scmp.ge.s32.totalorder %s782_s12, 1  ;;  %p116_p8 = scmp.lt.s32.totalorder %s782_s12, 3 }
   0xc   : > { %p117_p9 = pnand %p515_p7, %p116_p8 }
   0xd   : > { %v169_v0 = vld [vmem:[%s1128_s1 + $0x80] sm:$0xff] (!%p117_p9)  ;;  %v170_v1 = vld [vmem:[%s1128_s1 + $0x88] sm:$0xff] (!%p117_p9)  ;;  %vm185_vm0 = vcmask (!%p117_p9), 408576   ;;  %s517_s27 = sshll.u32 (!%p117_p9), %s823_s13, 3  ;;  %v171_v6 = vld [vmem:[%s1128_s1 + $0x90] sm:$0xff] (!%p117_p9)  ;;  %s135_s7 = sand.u32 (!%p117_p9), 1, %s774_s10  }
   0xe   : > { %120 = sbr.rel (%p117_p9) target bundleno = 320 (0x140), region = 28  ;;  %v153_v2 = vld [vmem:[%s1128_s1] sm:$0xff] (!%p117_p9)  ;;  %v615_v3 = vpack.c.bf16 (!%p117_p9), %v170_v1, %v169_v0  ;;  %vm862_vm1 = vmpackc.low (!%p117_p9), %vm185_vm0, %vm185_vm0  ;;  %v154_v5 = vld [vmem:[%s1128_s1 + $0x8] sm:$0xff] (!%p117_p9)  ;;  %p139_p10 = scmp.lt.s32.totalorder (!%p117_p9), %s517_s27, 15 }
   0xf   : > { %v618_v7 = vpack.c.bf16 (!%p117_p9), %v154_v5, %v153_v2  ;;  %v172_v8 = vld [vmem:[%s1128_s1 + $0x98] sm:$0xff] (!%p117_p9)  ;;  %v155_v10 = vld [vmem:[%s1128_s1 + $0x10] sm:$0xff] (!%p117_p9)  ;;  %v173_v12 = vld [vmem:[%s1128_s1 + $0xa0] sm:$0xff] (!%p117_p9)  ;;  %s516_s8 = sshll.u32 (!%p117_p9), %s135_s7, 7  ;;  %s784_s24 = smov (!%p117_p9), [#allocation2]  }
  0x10   : > { %617 = vmatprep.subr.msk.bf16.mxu0 (!%p117_p9), %vm862_vm1, %v615_v3  ;;  %663 = vmatprep.subr.msk.bf16.mxu1 (!%p117_p9), %vm862_vm1, %v615_v3  ;;  %v621_v9 = vpack.c.bf16 (!%p117_p9), %v172_v8, %v171_v6  ;;  %v156_v11 = vld [vmem:[%s1128_s1 + $0x18] sm:$0xff] (!%p117_p9)  ;;  %v174_v13 = vld [vmem:[%s1128_s1 + $0xa8] sm:$0xff] (!%p117_p9)  ;;  %v157_v18 = vld [vmem:[%s1128_s1 + $0x20] sm:$0xff] (!%p117_p9)  ;;  %s1057_s14 = scalar_lea.vmem (!%p117_p9), [#allocation2], %s516_s8  ;;  %s724_s25 = sshll.u32 (!%p117_p9), %s784_s24, 4  ;;  %s725_s25 = int_to_ptr.vmem [resolvable:$false] %s724_s25 }
  0x11   : > { %620 = vmatpush3.bf16.xpose.msk.msra.mxu0 (!%p117_p9), %vm862_vm1, %v618_v7  ;;  %671 = vmatpush3.bf16.xpose.msk.msra.mxu1 (!%p117_p9), %vm862_vm1, %v618_v7  ;;  %v624_v14 = vpack.c.bf16 (!%p117_p9), %v156_v11, %v155_v10  ;;  %v627_v15 = vpack.c.bf16 (!%p117_p9), %v174_v13, %v173_v12  ;;  %v158_v19 = vld [vmem:[%s1128_s1 + $0x28] sm:$0xff] (!%p117_p9)  ;;  %v175_v20 = vld [vmem:[%s1128_s1 + $0xb0] sm:$0xff] (!%p117_p9)  ;;  %v176_v21 = vld [vmem:[%s1128_s1 + $0xb8] sm:$0xff] (!%p117_p9) }
  0x12   : > { %623 = vmatprep.subr.msk.bf16.mxu0 (!%p117_p9), %vm862_vm1, %v621_v9  ;;  %664 = vmatprep.subr.msk.bf16.mxu1 (!%p117_p9), %vm862_vm1, %v621_v9  ;;  %v630_v22 = vpack.c.bf16 (!%p117_p9), %v158_v19, %v157_v18  ;;  %v633_v23 = vpack.c.bf16 (!%p117_p9), %v176_v21, %v175_v20  ;;  %v159_v24 = vld [vmem:[%s1128_s1 + $0x30] sm:$0xff] (!%p117_p9)  ;;  %v160_v25 = vld [vmem:[%s1128_s1 + $0x38] sm:$0xff] (!%p117_p9)  ;;  %v177_v26 = vld [vmem:[%s1128_s1 + $0xc0] sm:$0xff] (!%p117_p9) }
  0x13   : > { %v178_v27 = vld [vmem:[%s1128_s1 + $0xc8] sm:$0xff] (!%p117_p9)  ;;  %v636_v28 = vpack.c.bf16 (!%p117_p9), %v160_v25, %v159_v24  ;;  %v161_v30 = vld [vmem:[%s1128_s1 + $0x40] sm:$0xff] (!%p117_p9)  ;;  %v179_v32 = vld [vmem:[%s1128_s1 + $0xd0] sm:$0xff] (!%p117_p9) }
  0x14   : > { %v639_v29 = vpack.c.bf16 (!%p117_p9), %v178_v27, %v177_v26  ;;  %v162_v31 = vld [vmem:[%s1128_s1 + $0x48] sm:$0xff] (!%p117_p9)  ;;  %v180_v33 = vld [vmem:[%s1128_s1 + $0xd8] sm:$0xff] (!%p117_p9)  ;;  %v163_v36 = vld [vmem:[%s1128_s1 + $0x50] sm:$0xff] (!%p117_p9) }
  0x15   : > { %s1139_s27 = smov (!%p139_p10, %s517_s27), 15  ;;  %v642_v34 = vpack.c.bf16 %v162_v31, %v161_v30  ;;  %v645_v35 = vpack.c.bf16 %v180_v33, %v179_v32  ;;  %v164_v37 = vld [vmem:[%s1128_s1 + $0x58] sm:$0xff]  ;;  %v181_v38 = vld [vmem:[%s1128_s1 + $0xe0] sm:$0xff]  ;;  %v182_v39 = vld [vmem:[%s1128_s1 + $0xe8] sm:$0xff] }
  0x16   : > { %s518_s16 = sshll.u32 %s1139_s27, 3  ;;  %v648_v40 = vpack.c.bf16 %v164_v37, %v163_v36  ;;  %v651_v41 = vpack.c.bf16 %v182_v39, %v181_v38  ;;  %v165_v42 = vld [vmem:[%s1128_s1 + $0x60] sm:$0xff]  ;;  %v166_v43 = vld [vmem:[%s1128_s1 + $0x68] sm:$0xff]  ;;  %v183_v44 = vld [vmem:[%s1128_s1 + $0xf0] sm:$0xff]  ;;  %s726_s27 = scalar_lea.vmem %s725_s25, 4096 }
  0x17   : > { %s902_s26 = scalar_lea.vmem %s1127_s0, %s518_s16  ;;  %v184_v45 = vld [vmem:[%s1128_s1 + $0xf8] sm:$0xff]  ;;  %v654_v46 = vpack.c.bf16 %v166_v43, %v165_v42  ;;  %v167_v48 = vld [vmem:[%s1128_s1 + $0x70] sm:$0xff]  ;;  %s450_s16 = sshll.u32 %s1057_s14, 4  ;;  %s1078_s16 = int_to_ptr.vmem [resolvable:$true] %s450_s16 }
  0x18   : > { %v905_v16 = vld [vmem:[%s902_s26] sm:$0xff]  ;;  %v657_v47 = vpack.c.bf16 %v184_v45, %v183_v44  ;;  %v168_v49 = vld [vmem:[%s1128_s1 + $0x78] sm:$0xff]  ;;  %v146_v51 = vld [vmem:[%s902_s26 + $0x8] sm:$0xff]  ;;  %s720_s23 = scalar_lea.vmem %s1078_s16, 2048  ;;  %p727_p0 = scmp.lt.s32.totalorder %s1078_s16, %s725_s25 }
  0x19   : > { %v908_v17 = vld [vmem:[%s902_s26 + $0x20] sm:$0xff]  ;;  %626 = vmatpush3.bf16.xpose.msk.msra.mxu0 %vm862_vm1, %v624_v14  ;;  %672 = vmatpush3.bf16.xpose.msk.msra.mxu1 %vm862_vm1, %v624_v14  ;;  %v660_v50 = vpack.c.bf16 %v168_v49, %v167_v48  ;;  %v150_v52 = vld [vmem:[%s902_s26 + $0x28] sm:$0xff]  ;;  %v147_v53 = vld [vmem:[%s902_s26 + $0x10] sm:$0xff]  ;;  %p721_p11 = scmp.ne.s32.totalorder %s1078_s16, %s720_s23  ;;  %p728_p1 = scmp.lt.s32.totalorder %s726_s27, %s720_s23 }
  0x1a   : > { %629 = vmatprep.subr.msk.bf16.mxu0 %vm862_vm1, %v627_v15  ;;  %665 = vmatprep.subr.msk.bf16.mxu1 %vm862_vm1, %v627_v15  ;;  %v151_v54 = vld [vmem:[%s902_s26 + $0x30] sm:$0xff]  ;;  %v148_v55 = vld [vmem:[%s902_s26 + $0x18] sm:$0xff] }
  0x1b   : > { %599 = vmatprep.mubr.msk.f32.mxu0 %vm185_vm0, %v905_v16  ;;  %607 = vmatprep.mubr.msk.f32.mxu1 %vm185_vm0, %v908_v17  ;;  %v152_v56 = vld [vmem:[%s902_s26 + $0x38] sm:$0xff]  ;;  %s566_s26 = sshll.u32 %s823_s13, 11  ;;  %s1086_s13 = scalar_lea.sflag [#allocation3], %s135_s7 }
  0x1c   : > { %s1076_s22 = scalar_lea.hbm %s1129_s2, %s566_s26  ;;  %p722_p12 = pnand %p721_p11, %p840_p5 }
  0x1d   : > { %p729_p2 = por %p728_p1, %p727_p0 }
  0x1e   : > { %p723_p13 = pneg %p722_p12 }
  0x20   : > { %p730_p3 = pnand %p729_p2, %p723_p13 }
  0x21   : > { %632 = vmatpush3.bf16.xpose.msk.msra.mxu0 %vm862_vm1, %v630_v22  ;;  %673 = vmatpush3.bf16.xpose.msk.msra.mxu1 %vm862_vm1, %v630_v22 }
  0x22   : > { %635 = vmatprep.subr.msk.bf16.mxu0 %vm862_vm1, %v633_v23  ;;  %666 = vmatprep.subr.msk.bf16.mxu1 %vm862_vm1, %v633_v23 }
  0x29   : > { %638 = vmatpush3.bf16.xpose.msk.msra.mxu0 %vm862_vm1, %v636_v28  ;;  %674 = vmatpush3.bf16.xpose.msk.msra.mxu1 %vm862_vm1, %v636_v28 }
  0x2a   : > { %641 = vmatprep.subr.msk.bf16.mxu0 %vm862_vm1, %v639_v29  ;;  %667 = vmatprep.subr.msk.bf16.mxu1 %vm862_vm1, %v639_v29 }
  0x31   : > { %644 = vmatpush3.bf16.xpose.msk.msra.mxu0 %vm862_vm1, %v642_v34  ;;  %675 = vmatpush3.bf16.xpose.msk.msra.mxu1 %vm862_vm1, %v642_v34 }
  0x32   : > { %647 = vmatprep.subr.msk.bf16.mxu0 %vm862_vm1, %v645_v35  ;;  %668 = vmatprep.subr.msk.bf16.mxu1 %vm862_vm1, %v645_v35 }
  0x39   : > { %650 = vmatpush3.bf16.xpose.msk.msra.mxu0 %vm862_vm1, %v648_v40  ;;  %676 = vmatpush3.bf16.xpose.msk.msra.mxu1 %vm862_vm1, %v648_v40 }
  0x3a   : > { %653 = vmatprep.subr.msk.bf16.mxu0 %vm862_vm1, %v651_v41  ;;  %669 = vmatprep.subr.msk.bf16.mxu1 %vm862_vm1, %v651_v41 }
  0x41   : > { %656 = vmatpush3.bf16.xpose.msk.msra.mxu0 %vm862_vm1, %v654_v46  ;;  %677 = vmatpush3.bf16.xpose.msk.msra.mxu1 %vm862_vm1, %v654_v46 }
  0x42   : > { %659 = vmatprep.subr.msk.bf16.mxu0 %vm862_vm1, %v657_v47  ;;  %670 = vmatprep.subr.msk.bf16.mxu1 %vm862_vm1, %v657_v47 }
  0x49   : > { %662 = vmatpush3.bf16.xpose.msk.msra.mxu0 %vm862_vm1, %v660_v50  ;;  %678 = vmatpush3.bf16.xpose.msk.msra.mxu1 %vm862_vm1, %v660_v50 }
  0x50   : > { %600 = vmatmul.mubr.msk.f32.vlgmr.msra.gmra.mrb[0].mxu0 %vm185_vm0, %v905_v16  ;;  %608 = vmatmul.mubr.msk.f32.vlgmr.msra.gmra.mrb[0].mxu1 %vm185_vm0, %v908_v17 }
  0x51   : > { %601 = vmatprep.mubr.msk.f32.mxu0 %vm185_vm0, %v146_v51  ;;  %609 = vmatprep.mubr.msk.f32.mxu1 %vm185_vm0, %v150_v52 }
  0x54   : > { %602 = vmatmul.mubr.msk.f32.gmra.mrb[2].mxu0 %vm185_vm0, %v146_v51  ;;  %610 = vmatmul.mubr.msk.f32.gmra.mrb[2].mxu1 %vm185_vm0, %v150_v52 }
  0x55   : > { %603 = vmatprep.mubr.msk.f32.mxu0 %vm185_vm0, %v147_v53  ;;  %611 = vmatprep.mubr.msk.f32.mxu1 %vm185_vm0, %v151_v54 }
  0x58   : > { %604 = vmatmul.mubr.msk.f32.gmra.mrb[4].mxu0 %vm185_vm0, %v147_v53  ;;  %612 = vmatmul.mubr.msk.f32.gmra.mrb[4].mxu1 %vm185_vm0, %v151_v54 }
  0x59   : > { %605 = vmatprep.mubr.msk.f32.mxu0 %vm185_vm0, %v148_v55  ;;  %613 = vmatprep.mubr.msk.f32.mxu1 %vm185_vm0, %v152_v56 }
  0x5c   : > { %606 = vmatmul.mubr.msk.f32.gmra.mrb[6].mxu0 %vm185_vm0, %v148_v55  ;;  %614 = vmatmul.mubr.msk.f32.gmra.mrb[6].mxu1 %vm185_vm0, %v152_v56 }
 0x123   : > { %v372_v57 = vpop.f32.mrb[0].mxu0  ;;  %v396_v58 = vpop.f32.mrb[0].mxu1 }
 0x124   : > { %419 = vst [vmem:[%s1057_s14] sm:$0xff] %v372_v57  ;;  %427 = vst [vmem:[%s1057_s14 + $0x40] sm:$0xff] %v396_v58  ;;  %v374_v59 = vpop.f32.mrb[1].mxu0  ;;  %v398_v60 = vpop.f32.mrb[1].mxu1 }
 0x125   : > { %420 = vst [vmem:[%s1057_s14 + $0x8] sm:$0xff] %v374_v59  ;;  %428 = vst [vmem:[%s1057_s14 + $0x48] sm:$0xff] %v398_v60 }
 0x127   : > { %v378_v61 = vpop.f32.mrb[2].mxu0  ;;  %v402_v62 = vpop.f32.mrb[2].mxu1 }
 0x128   : > { %421 = vst [vmem:[%s1057_s14 + $0x10] sm:$0xff] %v378_v61  ;;  %429 = vst [vmem:[%s1057_s14 + $0x50] sm:$0xff] %v402_v62  ;;  %v380_v63 = vpop.f32.mrb[3].mxu0  ;;  %v404_v0 = vpop.f32.mrb[3].mxu1 }
 0x129   : > { %422 = vst [vmem:[%s1057_s14 + $0x18] sm:$0xff] %v380_v63  ;;  %430 = vst [vmem:[%s1057_s14 + $0x58] sm:$0xff] %v404_v0 }
 0x12b   : > { %v384_v1 = vpop.f32.mrb[4].mxu0  ;;  %v408_v2 = vpop.f32.mrb[4].mxu1 }
 0x12c   : > { %423 = vst [vmem:[%s1057_s14 + $0x20] sm:$0xff] %v384_v1  ;;  %431 = vst [vmem:[%s1057_s14 + $0x60] sm:$0xff] %v408_v2  ;;  %v386_v3 = vpop.f32.mrb[5].mxu0  ;;  %v410_v4 = vpop.f32.mrb[5].mxu1 }
 0x12d   : > { %424 = vst [vmem:[%s1057_s14 + $0x28] sm:$0xff] %v386_v3  ;;  %432 = vst [vmem:[%s1057_s14 + $0x68] sm:$0xff] %v410_v4 }
 0x12f   : > { %v390_v5 = vpop.f32.mrb[6].mxu0  ;;  %v414_v6 = vpop.f32.mrb[6].mxu1 }
 0x130   : > { %425 = vst [vmem:[%s1057_s14 + $0x30] sm:$0xff] %v390_v5  ;;  %433 = vst [vmem:[%s1057_s14 + $0x70] sm:$0xff] %v414_v6  ;;  %v392_v7 = vpop.f32.mrb[7].mxu0  ;;  %v416_v8 = vpop.f32.mrb[7].mxu1 }
 0x131   : > { %426 = vst [vmem:[%s1057_s14 + $0x38] sm:$0xff] %v392_v7  ;;  %434 = vst [vmem:[%s1057_s14 + $0x78] sm:$0xff] %v416_v8 }
 0x132   : > { %733 = shalt.err (!%p730_p3)
}
 0x133   : > { %s734_s28 = scalar_lea.hbm %s1076_s22, 2048  ;;  %s738_s3 = scalar_lea.hbm %s1129_s2, 4096 }
 0x134   : > { %p735_p4 = scmp.ne.s32.totalorder %s1076_s22, %s734_s28  ;;  %p739_p9 = scmp.lt.u32.totalorder %s1076_s22, %s1129_s2 }
 0x135   : > { %p740_p10 = scmp.lt.u32.totalorder %s738_s3, %s734_s28  ;;  %p742_p12 = scmp.lt.u32.totalorder %s734_s28, %s1076_s22 }
 0x136   : > { %p736_p7 = pnand %p735_p4, %p840_p5 }
 0x137   : > { %p741_p11 = por %p740_p10, %p739_p9 }
 0x138   : > { %p737_p8 = pneg %p736_p7 }
 0x139   : > { %p743_p13 = por %p742_p12, %p741_p11 }
 0x13b   : > { %p744_p0 = pnand %p743_p13, %p737_p8 }
 0x13d   : > { %747 = shalt.err (!%p744_p0)
}
 0x13e   : > { %s785_s6 = smov 256   ;;  %s786_s7 = smov 16  }
 0x13f   : > { %679 = dma.vmem_to_hbm [thread:$0]  (%p840_p5), %s1078_s16, 2048, %s1076_s22, %s1086_s13, %s785_s6, %s785_s6, %s786_s7  }
 0x140 PF: > { %p685_p1 = scmp.ge.s32.totalorder %s782_s12, 2  ;;  %s465_s8 = sand.u32 1, %s770_s9  }
 0x141   : > { %s466_s14 = scalar_lea.sflag [#allocation3], %s465_s8 }
 0x142   : > { %p682_p2 = pnand %p685_p1, %p844_p6 }
 0x144   : > { %765 = dma.done.wait (!%p682_p2), %s466_s14, 2048  }
 0x145   : > { %767 = vsyncadd (!%p682_p2), %s466_s14, 4294965248  ;;  %p12_p3 = scmp.ge.s32.totalorder %s827_s15, 4   ;;  %s1134_s9 = smov %s774_s10 }
 0x146   : > { %s1135_s10 = smov %s778_s11  ;;  %s1136_s11 = smov %s838_s18 }
 0x147   : > { %s1137_s12 = smov %s827_s15  ;;  %14 = sbr.rel (!%p12_p3) target bundleno = 3 (0x3), region = 63 }
 0x14e   :  { %471 = vsyncpa [#allocation3], 1 }
 0x14f   :  { %473 = vsyncpa [#allocation3 + $0x1], 1 }

// kernel: tpu_custom_call.1
= control target key start
LH: loop header
LB: loop body
LE: loop exit
PB: predicated region body
PF: predicated region fallthrough
CT: control target
= control target key end

     0   :  { %7 = vsyncpa [#allocation3], 0  ;;  %s1127_s0 = inlined_call_operand.vmem [shape: f32[128,50], index: 0, kind: input, shape index: {}]   ;;  %s1128_s1 = inlined_call_operand.vmem [shape: f32[256,50], index: 1, kind: input, shape index: {}]   ;;  %s1129_s2 = inlined_call_operand.hbm [shape: f32[128,256], index: 2, kind: output, shape index: {}]  }
   0x1   :  { %9 = vsyncpa [#allocation3 + $0x1], 0  ;;  %s802_s9 = smov 0   ;;  %s804_s10 = smov 0  }
   0x2   :  { %s806_s11 = smov 0   ;;  %s808_s12 = smov 0  }
   0x3 LB: > { %s823_s13 = sadd.s32 4294967295, %s782_s12   ;;  %s512_s14 = sadd.s32 4294967294, %s782_s12   ;;  %s782_s12 = sphi %s808_s12, %s1137_s12   ;;  %s778_s11 = sphi %s806_s11, %s1136_s11   ;;  %s774_s10 = sphi %s804_s10, %s1135_s10   ;;  %s770_s9 = sphi %s802_s9, %s1134_s9  }
   0x4   : > { %s827_s15 = sadd.s32 1, %s782_s12   ;;  %s69_s16 = sadd.s32 1, %s778_s11 }
   0x5   : > { %s66_s17 = ssub.s32 %s782_s12, %s827_s15  ;;  %p79_p0 = scmp.ne.s32.totalorder %s778_s11, %s774_s10 }
   0x6   : > { %p67_p1 = scmp.eq.s32.totalorder %s66_s17, 0  ;;  %p80_p2 = scmp.eq.s32.totalorder %s823_s13, 1 }
   0x7   : > { %p85_p3 = scmp.ne.s32.totalorder %s774_s10, %s770_s9  ;;  %p86_p4 = scmp.eq.s32.totalorder %s512_s14, 1 }
   0x8   : > { %s838_s18 = scalar_select %p67_p1, %s778_s11, %s69_s16  }
   0x9   : > { %p840_p5 = por %p80_p2, %p79_p0  ;;  %p844_p6 = por %p86_p4, %p85_p3 }
   0xa   : > { %p515_p7 = scmp.ge.s32.totalorder %s782_s12, 1  ;;  %p116_p8 = scmp.lt.s32.totalorder %s782_s12, 3 }
   0xc   : > { %p117_p9 = pnand %p515_p7, %p116_p8 }
   0xd   : > { %v169_v0 = vld [vmem:[%s1128_s1 + $0x80] sm:$0xff] (!%p117_p9)  ;;  %v170_v1 = vld [vmem:[%s1128_s1 + $0x88] sm:$0xff] (!%p117_p9)  ;;  %vm185_vm0 = vcmask (!%p117_p9), 408576   ;;  %s517_s27 = sshll.u32 (!%p117_p9), %s823_s13, 3  ;;  %v171_v6 = vld [vmem:[%s1128_s1 + $0x90] sm:$0xff] (!%p117_p9)  ;;  %s135_s7 = sand.u32 (!%p117_p9), 1, %s774_s10  }
   0xe   : > { %120 = sbr.rel (%p117_p9) target bundleno = 320 (0x140), region = 28  ;;  %v153_v2 = vld [vmem:[%s1128_s1] sm:$0xff] (!%p117_p9)  ;;  %v615_v3 = vpack.c.bf16 (!%p117_p9), %v170_v1, %v169_v0  ;;  %vm862_vm1 = vmpackc.low (!%p117_p9), %vm185_vm0, %vm185_vm0  ;;  %v154_v5 = vld [vmem:[%s1128_s1 + $0x8] sm:$0xff] (!%p117_p9)  ;;  %p139_p10 = scmp.lt.s32.totalorder (!%p117_p9), %s517_s27, 15 }
   0xf   : > { %v618_v7 = vpack.c.bf16 (!%p117_p9), %v154_v5, %v153_v2  ;;  %v172_v8 = vld [vmem:[%s1128_s1 + $0x98] sm:$0xff] (!%p117_p9)  ;;  %v155_v10 = vld [vmem:[%s1128_s1 + $0x10] sm:$0xff] (!%p117_p9)  ;;  %v173_v12 = vld [vmem:[%s1128_s1 + $0xa0] sm:$0xff] (!%p117_p9)  ;;  %s516_s8 = sshll.u32 (!%p117_p9), %s135_s7, 7  ;;  %s784_s24 = smov (!%p117_p9), [#allocation2]  }
  0x10   : > { %617 = vmatprep.subr.msk.bf16.mxu0 (!%p117_p9), %vm862_vm1, %v615_v3  ;;  %663 = vmatprep.subr.msk.bf16.mxu1 (!%p117_p9), %vm862_vm1, %v615_v3  ;;  %v621_v9 = vpack.c.bf16 (!%p117_p9), %v172_v8, %v171_v6  ;;  %v156_v11 = vld [vmem:[%s1128_s1 + $0x18] sm:$0xff] (!%p117_p9)  ;;  %v174_v13 = vld [vmem:[%s1128_s1 + $0xa8] sm:$0xff] (!%p117_p9)  ;;  %v157_v18 = vld [vmem:[%s1128_s1 + $0x20] sm:$0xff] (!%p117_p9)  ;;  %s1057_s14 = scalar_lea.vmem (!%p117_p9), [#allocation2], %s516_s8  ;;  %s724_s25 = sshll.u32 (!%p117_p9), %s784_s24, 4  ;;  %s725_s25 = int_to_ptr.vmem [resolvable:$false] %s724_s25 }
  0x11   : > { %620 = vmatpush3.bf16.xpose.msk.msra.mxu0 (!%p117_p9), %vm862_vm1, %v618_v7  ;;  %671 = vmatpush3.bf16.xpose.msk.msra.mxu1 (!%p117_p9), %vm862_vm1, %v618_v7  ;;  %v624_v14 = vpack.c.bf16 (!%p117_p9), %v156_v11, %v155_v10  ;;  %v627_v15 = vpack.c.bf16 (!%p117_p9), %v174_v13, %v173_v12  ;;  %v158_v19 = vld [vmem:[%s1128_s1 + $0x28] sm:$0xff] (!%p117_p9)  ;;  %v175_v20 = vld [vmem:[%s1128_s1 + $0xb0] sm:$0xff] (!%p117_p9)  ;;  %v176_v21 = vld [vmem:[%s1128_s1 + $0xb8] sm:$0xff] (!%p117_p9) }
  0x12   : > { %623 = vmatprep.subr.msk.bf16.mxu0 (!%p117_p9), %vm862_vm1, %v621_v9  ;;  %664 = vmatprep.subr.msk.bf16.mxu1 (!%p117_p9), %vm862_vm1, %v621_v9  ;;  %v630_v22 = vpack.c.bf16 (!%p117_p9), %v158_v19, %v157_v18  ;;  %v633_v23 = vpack.c.bf16 (!%p117_p9), %v176_v21, %v175_v20  ;;  %v159_v24 = vld [vmem:[%s1128_s1 + $0x30] sm:$0xff] (!%p117_p9)  ;;  %v160_v25 = vld [vmem:[%s1128_s1 + $0x38] sm:$0xff] (!%p117_p9)  ;;  %v177_v26 = vld [vmem:[%s1128_s1 + $0xc0] sm:$0xff] (!%p117_p9) }
  0x13   : > { %v178_v27 = vld [vmem:[%s1128_s1 + $0xc8] sm:$0xff] (!%p117_p9)  ;;  %v636_v28 = vpack.c.bf16 (!%p117_p9), %v160_v25, %v159_v24  ;;  %v161_v30 = vld [vmem:[%s1128_s1 + $0x40] sm:$0xff] (!%p117_p9)  ;;  %v179_v32 = vld [vmem:[%s1128_s1 + $0xd0] sm:$0xff] (!%p117_p9) }
  0x14   : > { %v639_v29 = vpack.c.bf16 (!%p117_p9), %v178_v27, %v177_v26  ;;  %v162_v31 = vld [vmem:[%s1128_s1 + $0x48] sm:$0xff] (!%p117_p9)  ;;  %v180_v33 = vld [vmem:[%s1128_s1 + $0xd8] sm:$0xff] (!%p117_p9)  ;;  %v163_v36 = vld [vmem:[%s1128_s1 + $0x50] sm:$0xff] (!%p117_p9) }
  0x15   : > { %s1139_s27 = smov (!%p139_p10, %s517_s27), 15  ;;  %v642_v34 = vpack.c.bf16 %v162_v31, %v161_v30  ;;  %v645_v35 = vpack.c.bf16 %v180_v33, %v179_v32  ;;  %v164_v37 = vld [vmem:[%s1128_s1 + $0x58] sm:$0xff]  ;;  %v181_v38 = vld [vmem:[%s1128_s1 + $0xe0] sm:$0xff]  ;;  %v182_v39 = vld [vmem:[%s1128_s1 + $0xe8] sm:$0xff] }
  0x16   : > { %s518_s16 = sshll.u32 %s1139_s27, 3  ;;  %v648_v40 = vpack.c.bf16 %v164_v37, %v163_v36  ;;  %v651_v41 = vpack.c.bf16 %v182_v39, %v181_v38  ;;  %v165_v42 = vld [vmem:[%s1128_s1 + $0x60] sm:$0xff]  ;;  %v166_v43 = vld [vmem:[%s1128_s1 + $0x68] sm:$0xff]  ;;  %v183_v44 = vld [vmem:[%s1128_s1 + $0xf0] sm:$0xff]  ;;  %s726_s27 = scalar_lea.vmem %s725_s25, 4096 }
  0x17   : > { %s902_s26 = scalar_lea.vmem %s1127_s0, %s518_s16  ;;  %v184_v45 = vld [vmem:[%s1128_s1 + $0xf8] sm:$0xff]  ;;  %v654_v46 = vpack.c.bf16 %v166_v43, %v165_v42  ;;  %v167_v48 = vld [vmem:[%s1128_s1 + $0x70] sm:$0xff]  ;;  %s450_s16 = sshll.u32 %s1057_s14, 4  ;;  %s1078_s16 = int_to_ptr.vmem [resolvable:$true] %s450_s16 }
  0x18   : > { %v905_v16 = vld [vmem:[%s902_s26] sm:$0xff]  ;;  %v657_v47 = vpack.c.bf16 %v184_v45, %v183_v44  ;;  %v168_v49 = vld [vmem:[%s1128_s1 + $0x78] sm:$0xff]  ;;  %v146_v51 = vld [vmem:[%s902_s26 + $0x8] sm:$0xff]  ;;  %s720_s23 = scalar_lea.vmem %s1078_s16, 2048  ;;  %p727_p0 = scmp.lt.s32.totalorder %s1078_s16, %s725_s25 }
  0x19   : > { %v908_v17 = vld [vmem:[%s902_s26 + $0x20] sm:$0xff]  ;;  %626 = vmatpush3.bf16.xpose.msk.msra.mxu0 %vm862_vm1, %v624_v14  ;;  %672 = vmatpush3.bf16.xpose.msk.msra.mxu1 %vm862_vm1, %v624_v14  ;;  %v660_v50 = vpack.c.bf16 %v168_v49, %v167_v48  ;;  %v150_v52 = vld [vmem:[%s902_s26 + $0x28] sm:$0xff]  ;;  %v147_v53 = vld [vmem:[%s902_s26 + $0x10] sm:$0xff]  ;;  %p721_p11 = scmp.ne.s32.totalorder %s1078_s16, %s720_s23  ;;  %p728_p1 = scmp.lt.s32.totalorder %s726_s27, %s720_s23 }
  0x1a   : > { %629 = vmatprep.subr.msk.bf16.mxu0 %vm862_vm1, %v627_v15  ;;  %665 = vmatprep.subr.msk.bf16.mxu1 %vm862_vm1, %v627_v15  ;;  %v151_v54 = vld [vmem:[%s902_s26 + $0x30] sm:$0xff]  ;;  %v148_v55 = vld [vmem:[%s902_s26 + $0x18] sm:$0xff] }
  0x1b   : > { %599 = vmatprep.mubr.msk.f32.mxu0 %vm185_vm0, %v905_v16  ;;  %607 = vmatprep.mubr.msk.f32.mxu1 %vm185_vm0, %v908_v17  ;;  %v152_v56 = vld [vmem:[%s902_s26 + $0x38] sm:$0xff]  ;;  %s566_s26 = sshll.u32 %s823_s13, 11  ;;  %s1086_s13 = scalar_lea.sflag [#allocation3], %s135_s7 }
  0x1c   : > { %s1076_s22 = scalar_lea.hbm %s1129_s2, %s566_s26  ;;  %p722_p12 = pnand %p721_p11, %p840_p5 }
  0x1d   : > { %p729_p2 = por %p728_p1, %p727_p0 }
  0x1e   : > { %p723_p13 = pneg %p722_p12 }
  0x20   : > { %p730_p3 = pnand %p729_p2, %p723_p13 }
  0x21   : > { %632 = vmatpush3.bf16.xpose.msk.msra.mxu0 %vm862_vm1, %v630_v22  ;;  %673 = vmatpush3.bf16.xpose.msk.msra.mxu1 %vm862_vm1, %v630_v22 }
  0x22   : > { %635 = vmatprep.subr.msk.bf16.mxu0 %vm862_vm1, %v633_v23  ;;  %666 = vmatprep.subr.msk.bf16.mxu1 %vm862_vm1, %v633_v23 }
  0x29   : > { %638 = vmatpush3.bf16.xpose.msk.msra.mxu0 %vm862_vm1, %v636_v28  ;;  %674 = vmatpush3.bf16.xpose.msk.msra.mxu1 %vm862_vm1, %v636_v28 }
  0x2a   : > { %641 = vmatprep.subr.msk.bf16.mxu0 %vm862_vm1, %v639_v29  ;;  %667 = vmatprep.subr.msk.bf16.mxu1 %vm862_vm1, %v639_v29 }
  0x31   : > { %644 = vmatpush3.bf16.xpose.msk.msra.mxu0 %vm862_vm1, %v642_v34  ;;  %675 = vmatpush3.bf16.xpose.msk.msra.mxu1 %vm862_vm1, %v642_v34 }
  0x32   : > { %647 = vmatprep.subr.msk.bf16.mxu0 %vm862_vm1, %v645_v35  ;;  %668 = vmatprep.subr.msk.bf16.mxu1 %vm862_vm1, %v645_v35 }
  0x39   : > { %650 = vmatpush3.bf16.xpose.msk.msra.mxu0 %vm862_vm1, %v648_v40  ;;  %676 = vmatpush3.bf16.xpose.msk.msra.mxu1 %vm862_vm1, %v648_v40 }
  0x3a   : > { %653 = vmatprep.subr.msk.bf16.mxu0 %vm862_vm1, %v651_v41  ;;  %669 = vmatprep.subr.msk.bf16.mxu1 %vm862_vm1, %v651_v41 }
  0x41   : > { %656 = vmatpush3.bf16.xpose.msk.msra.mxu0 %vm862_vm1, %v654_v46  ;;  %677 = vmatpush3.bf16.xpose.msk.msra.mxu1 %vm862_vm1, %v654_v46 }
  0x42   : > { %659 = vmatprep.subr.msk.bf16.mxu0 %vm862_vm1, %v657_v47  ;;  %670 = vmatprep.subr.msk.bf16.mxu1 %vm862_vm1, %v657_v47 }
  0x49   : > { %662 = vmatpush3.bf16.xpose.msk.msra.mxu0 %vm862_vm1, %v660_v50  ;;  %678 = vmatpush3.bf16.xpose.msk.msra.mxu1 %vm862_vm1, %v660_v50 }
  0x50   : > { %600 = vmatmul.mubr.msk.f32.vlgmr.msra.gmra.mrb[0].mxu0 %vm185_vm0, %v905_v16  ;;  %608 = vmatmul.mubr.msk.f32.vlgmr.msra.gmra.mrb[0].mxu1 %vm185_vm0, %v908_v17 }
  0x51   : > { %601 = vmatprep.mubr.msk.f32.mxu0 %vm185_vm0, %v146_v51  ;;  %609 = vmatprep.mubr.msk.f32.mxu1 %vm185_vm0, %v150_v52 }
  0x54   : > { %602 = vmatmul.mubr.msk.f32.gmra.mrb[2].mxu0 %vm185_vm0, %v146_v51  ;;  %610 = vmatmul.mubr.msk.f32.gmra.mrb[2].mxu1 %vm185_vm0, %v150_v52 }
  0x55   : > { %603 = vmatprep.mubr.msk.f32.mxu0 %vm185_vm0, %v147_v53  ;;  %611 = vmatprep.mubr.msk.f32.mxu1 %vm185_vm0, %v151_v54 }
  0x58   : > { %604 = vmatmul.mubr.msk.f32.gmra.mrb[4].mxu0 %vm185_vm0, %v147_v53  ;;  %612 = vmatmul.mubr.msk.f32.gmra.mrb[4].mxu1 %vm185_vm0, %v151_v54 }
  0x59   : > { %605 = vmatprep.mubr.msk.f32.mxu0 %vm185_vm0, %v148_v55  ;;  %613 = vmatprep.mubr.msk.f32.mxu1 %vm185_vm0, %v152_v56 }
  0x5c   : > { %606 = vmatmul.mubr.msk.f32.gmra.mrb[6].mxu0 %vm185_vm0, %v148_v55  ;;  %614 = vmatmul.mubr.msk.f32.gmra.mrb[6].mxu1 %vm185_vm0, %v152_v56 }
 0x123   : > { %v372_v57 = vpop.f32.mrb[0].mxu0  ;;  %v396_v58 = vpop.f32.mrb[0].mxu1 }
 0x124   : > { %419 = vst [vmem:[%s1057_s14] sm:$0xff] %v372_v57  ;;  %427 = vst [vmem:[%s1057_s14 + $0x40] sm:$0xff] %v396_v58  ;;  %v374_v59 = vpop.f32.mrb[1].mxu0  ;;  %v398_v60 = vpop.f32.mrb[1].mxu1 }
 0x125   : > { %420 = vst [vmem:[%s1057_s14 + $0x8] sm:$0xff] %v374_v59  ;;  %428 = vst [vmem:[%s1057_s14 + $0x48] sm:$0xff] %v398_v60 }
 0x127   : > { %v378_v61 = vpop.f32.mrb[2].mxu0  ;;  %v402_v62 = vpop.f32.mrb[2].mxu1 }
 0x128   : > { %421 = vst [vmem:[%s1057_s14 + $0x10] sm:$0xff] %v378_v61  ;;  %429 = vst [vmem:[%s1057_s14 + $0x50] sm:$0xff] %v402_v62  ;;  %v380_v63 = vpop.f32.mrb[3].mxu0  ;;  %v404_v0 = vpop.f32.mrb[3].mxu1 }
 0x129   : > { %422 = vst [vmem:[%s1057_s14 + $0x18] sm:$0xff] %v380_v63  ;;  %430 = vst [vmem:[%s1057_s14 + $0x58] sm:$0xff] %v404_v0 }
 0x12b   : > { %v384_v1 = vpop.f32.mrb[4].mxu0  ;;  %v408_v2 = vpop.f32.mrb[4].mxu1 }
 0x12c   : > { %423 = vst [vmem:[%s1057_s14 + $0x20] sm:$0xff] %v384_v1  ;;  %431 = vst [vmem:[%s1057_s14 + $0x60] sm:$0xff] %v408_v2  ;;  %v386_v3 = vpop.f32.mrb[5].mxu0  ;;  %v410_v4 = vpop.f32.mrb[5].mxu1 }
 0x12d   : > { %424 = vst [vmem:[%s1057_s14 + $0x28] sm:$0xff] %v386_v3  ;;  %432 = vst [vmem:[%s1057_s14 + $0x68] sm:$0xff] %v410_v4 }
 0x12f   : > { %v390_v5 = vpop.f32.mrb[6].mxu0  ;;  %v414_v6 = vpop.f32.mrb[6].mxu1 }
 0x130   : > { %425 = vst [vmem:[%s1057_s14 + $0x30] sm:$0xff] %v390_v5  ;;  %433 = vst [vmem:[%s1057_s14 + $0x70] sm:$0xff] %v414_v6  ;;  %v392_v7 = vpop.f32.mrb[7].mxu0  ;;  %v416_v8 = vpop.f32.mrb[7].mxu1 }
 0x131   : > { %426 = vst [vmem:[%s1057_s14 + $0x38] sm:$0xff] %v392_v7  ;;  %434 = vst [vmem:[%s1057_s14 + $0x78] sm:$0xff] %v416_v8 }
 0x132   : > { %733 = shalt.err (!%p730_p3)
}
 0x133   : > { %s734_s28 = scalar_lea.hbm %s1076_s22, 2048  ;;  %s738_s3 = scalar_lea.hbm %s1129_s2, 4096 }
 0x134   : > { %p735_p4 = scmp.ne.s32.totalorder %s1076_s22, %s734_s28  ;;  %p739_p9 = scmp.lt.u32.totalorder %s1076_s22, %s1129_s2 }
 0x135   : > { %p740_p10 = scmp.lt.u32.totalorder %s738_s3, %s734_s28  ;;  %p742_p12 = scmp.lt.u32.totalorder %s734_s28, %s1076_s22 }
 0x136   : > { %p736_p7 = pnand %p735_p4, %p840_p5 }
 0x137   : > { %p741_p11 = por %p740_p10, %p739_p9 }
 0x138   : > { %p737_p8 = pneg %p736_p7 }
 0x139   : > { %p743_p13 = por %p742_p12, %p741_p11 }
 0x13b   : > { %p744_p0 = pnand %p743_p13, %p737_p8 }
 0x13d   : > { %747 = shalt.err (!%p744_p0)
}
 0x13e   : > { %s785_s6 = smov 256   ;;  %s786_s7 = smov 16  }
 0x13f   : > { %679 = dma.vmem_to_hbm [thread:$0]  (%p840_p5), %s1078_s16, 2048, %s1076_s22, %s1086_s13, %s785_s6, %s785_s6, %s786_s7  }
 0x140 PF: > { %p685_p1 = scmp.ge.s32.totalorder %s782_s12, 2  ;;  %s465_s8 = sand.u32 1, %s770_s9  }
 0x141   : > { %s466_s14 = scalar_lea.sflag [#allocation3], %s465_s8 }
 0x142   : > { %p682_p2 = pnand %p685_p1, %p844_p6 }
 0x144   : > { %765 = dma.done.wait (!%p682_p2), %s466_s14, 2048  }
 0x145   : > { %767 = vsyncadd (!%p682_p2), %s466_s14, 4294965248  ;;  %p12_p3 = scmp.ge.s32.totalorder %s827_s15, 4   ;;  %s1134_s9 = smov %s774_s10 }
 0x146   : > { %s1135_s10 = smov %s778_s11  ;;  %s1136_s11 = smov %s838_s18 }
 0x147   : > { %s1137_s12 = smov %s827_s15  ;;  %14 = sbr.rel (!%p12_p3) target bundleno = 3 (0x3), region = 63 }
 0x14e   :  { %471 = vsyncpa [#allocation3], 1 }
 0x14f   :  { %473 = vsyncpa [#allocation3 + $0x1], 1 }

</bundles_post_ra>
